<compile_context>
chip_gen: v7x
topology: tpu7x:2x2x1
jax: 0.10.0
libtpu: 0.0.40
codegen_flags: <defaults>
</compile_context>

<pallas_src>
import jax
import jax.numpy as jnp
from jax.experimental import pallas as pl
from jax.experimental.pallas import tpu as pltpu


def _embed_pool_kernel(wid_sref, lens_ref, w_hbm, out_ref, buf, sem):
    # wid_sref : (N, L) int32 in SMEM (scalar prefetch)
    # lens_ref : (block_n, 1) f32 VMEM tile
    # w_hbm    : (V, D) f32 ref left in HBM (pl.ANY) -- DMA'd row by row
    # buf      : (block_n*L, D) f32 VMEM scratch for the gathered rows
    block_n, D = out_ref.shape
    _, L = wid_sref.shape
    V = w_hbm.shape[0]
    base = pl.program_id(0) * block_n

    def row_copy(b, l):
        wid = wid_sref[base + b, l]
        # Clamp out-of-range ids: PyTorch would raise; an unclamped id here
        # would be an out-of-bounds HBM DMA.  (Silent semantic difference.)
        wid = jnp.minimum(jnp.maximum(wid, 0), V - 1)
        return pltpu.make_async_copy(w_hbm.at[wid], buf.at[b * L + l], sem.at[0])

    # Issue every row gather first (they all run concurrently on the DMA
    # engines) ...
    @pl.loop(0, block_n)
    def _issue(b):
        @pl.loop(0, L)
        def _(l):
            row_copy(b, l).start()

    # ... then drain the shared semaphore: one wait per copy, all copies are
    # the same size, so the totals match exactly.
    @pl.loop(0, block_n)
    def _drain(b):
        @pl.loop(0, L)
        def _(l):
            row_copy(b, l).wait()

    lens = lens_ref[...]                                              # (bn, 1) f32
    pos = jax.lax.broadcasted_iota(jnp.int32, (block_n, L), 1).astype(jnp.float32)
    mask = (pos < lens).astype(jnp.float32)                           # (bn, L)
    emb = buf[...].reshape(block_n, L, D)                             # (bn, L, D)
    pooled = jnp.sum(emb * mask[:, :, None], axis=1)                  # (bn, D)  VPU/XLU
    out_ref[...] = pooled * pl.reciprocal(lens, approx=True)          # divide on EUP


def embedding_encoder(wordids, lens, weight, *, block_n=8):
    """wordids: (N, L) int, lens: (N,) int, weight: (V, D) float32 -> (N, D)."""
    N, L = wordids.shape
    V, D = weight.shape
    assert N % block_n == 0, "batch must tile evenly by block_n"
    lens_f = lens.astype(jnp.float32).reshape(N, 1)

    return pl.pallas_call(
        _embed_pool_kernel,
        out_shape=jax.ShapeDtypeStruct((N, D), jnp.float32),
        grid_spec=pltpu.PrefetchScalarGridSpec(
            num_scalar_prefetch=1,                       # wordids -> SMEM
            grid=(N // block_n,),
            in_specs=[
                pl.BlockSpec((block_n, 1), lambda i, wid: (i, 0)),   # lens tile
                pl.BlockSpec(memory_space=pl.ANY),                   # table stays in HBM
            ],
            out_specs=pl.BlockSpec((block_n, D), lambda i, wid: (i, 0)),
            scratch_shapes=[
                pltpu.VMEM((block_n * L, D), jnp.float32),           # gathered rows
                pltpu.SemaphoreType.DMA((1,)),
            ],
        ),
        compiler_params=pltpu.CompilerParams(dimension_semantics=("parallel",)),
    )(wordids.astype(jnp.int32), lens_f, weight.astype(jnp.float32))


def _reference(wordids, lens, weight):
    N, L = wordids.shape
    emb = weight[wordids]                                   # (N, L, D)
    mask = (jnp.arange(L)[None, :] < lens[:, None]).astype(jnp.float32)
    pooled = (emb * mask[..., None]).sum(axis=1)
    return pooled / lens.astype(jnp.float32)[:, None]


if __name__ == "__main__":
    # Small, deterministic problem consistent with the module's forward.
    VOCAB, EMBED = 512, 128
    N, MAXLEN = 16, 16

    key = jax.random.PRNGKey(0)
    k_w, k_ids, k_len = jax.random.split(key, 3)

    # nn.init.kaiming_uniform_ on a (V, D) tensor: fan_in = D, bound = sqrt(6/fan_in)
    bound = (6.0 / EMBED) ** 0.5
    weight = jax.random.uniform(k_w, (VOCAB, EMBED), jnp.float32, -bound, bound)

    wordids = jax.random.randint(k_ids, (N, MAXLEN), 0, VOCAB, dtype=jnp.int32)
    lens = jax.random.randint(k_len, (N,), 1, MAXLEN + 1, dtype=jnp.int32)

    out = embedding_encoder(wordids, lens, weight)
    out = jax.block_until_ready(out)

    ref = _reference(wordids, lens, weight)
    assert out.shape == (N, EMBED)
    # approx reciprocal (EUP) -> slightly looser tolerance than exact divide
    assert jnp.allclose(out, ref, atol=1e-3, rtol=1e-3), "mismatch vs reference"

    print("KERNEL_OK")
</pallas_src>

<mosaic_0001>
module attributes {stable_mosaic.version = 11 : i64} {
  func.func @_embed_pool_kernel(%arg0: i32, %arg1: memref<16x16xi32, #tpu.memory_space<smem>>, %arg2: memref<8x1xf32, #tpu.memory_space<vmem>>, %arg3: memref<512x128xf32, #tpu.memory_space<any>>, %arg4: memref<8x128xf32, #tpu.memory_space<vmem>>, %arg5: memref<128x128xf32, #tpu.memory_space<vmem>>, %arg6: memref<1x!tpu.dma_semaphore, #tpu.memory_space<semaphore_mem>>) attributes {dimension_semantics = [#tpu.dimension_semantics<parallel>], iteration_bounds = array<i64: 2>, scalar_prefetch = 1 : i64, scratch_operands = 2 : i64, tpu.core_type = #tpu.core_type<tc>, window_params = [{transform_indices = @transform_0, window_bounds = array<i64: 8, 1>}, {}, {transform_indices = @transform_2, window_bounds = array<i64: 8, 128>}]} {
    %c8_i32 = arith.constant 8 : i32
    %0 = arith.muli %arg0, %c8_i32 : i32
    %c0_i32 = arith.constant 0 : i32
    %c8_i32_0 = arith.constant 8 : i32
    %1 = arith.addi %c0_i32, %c8_i32_0 : i32
    %c1_i32 = arith.constant 1 : i32
    scf.for %arg7 = %c0_i32 to %1 step %c1_i32  : i32 {
      %c1_i32_11 = arith.constant 1 : i32
      %20 = arith.muli %arg7, %c1_i32_11 : i32
      %c0_i32_12 = arith.constant 0 : i32
      %21 = arith.addi %c0_i32_12, %20 : i32
      %c0_i32_13 = arith.constant 0 : i32
      %c16_i32 = arith.constant 16 : i32
      %22 = arith.addi %c0_i32_13, %c16_i32 : i32
      %c1_i32_14 = arith.constant 1 : i32
      scf.for %arg8 = %c0_i32_13 to %22 step %c1_i32_14  : i32 {
        %c1_i32_16 = arith.constant 1 : i32
        %23 = arith.muli %arg8, %c1_i32_16 : i32
        %c0_i32_17 = arith.constant 0 : i32
        %24 = arith.addi %c0_i32_17, %23 : i32
        %25 = arith.addi %0, %21 : i32
        %26 = arith.index_cast %25 : i32 to index
        %27 = arith.index_cast %24 : i32 to index
        %28 = memref.load %arg1[%26, %27] : memref<16x16xi32, #tpu.memory_space<smem>>
        %c0_i32_18 = arith.constant 0 : i32
        %29 = arith.maxsi %28, %c0_i32_18 : i32
        %c511_i32 = arith.constant 511 : i32
        %30 = arith.minsi %29, %c511_i32 : i32
        %c16_i32_19 = arith.constant 16 : i32
        %31 = arith.muli %21, %c16_i32_19 : i32
        %32 = arith.addi %31, %24 : i32
        %c0_i32_20 = arith.constant 0 : i32
        %c0_i32_21 = arith.constant 0 : i32
        %33 = tpu.memref_slice %arg3[%30, %c0_i32_21] : memref<512x128xf32, #tpu.memory_space<any>> -> memref<1x128xf32, #tpu.memory_space<any>>
        %34 = tpu.memref_squeeze %33 : memref<1x128xf32, #tpu.memory_space<any>> -> memref<128xf32, #tpu.memory_space<any>>
        %c0_i32_22 = arith.constant 0 : i32
        %35 = tpu.memref_slice %arg5[%32, %c0_i32_22] : memref<128x128xf32, #tpu.memory_space<vmem>> -> memref<1x128xf32, #tpu.memory_space<vmem>>
        %36 = tpu.memref_squeeze %35 : memref<1x128xf32, #tpu.memory_space<vmem>> -> memref<128xf32, #tpu.memory_space<vmem>>
        %37 = tpu.memref_slice %arg6[%c0_i32_20] : memref<1x!tpu.dma_semaphore, #tpu.memory_space<semaphore_mem>> -> memref<1x!tpu.dma_semaphore, #tpu.memory_space<semaphore_mem>>
        %38 = tpu.memref_squeeze %37 : memref<1x!tpu.dma_semaphore, #tpu.memory_space<semaphore_mem>> -> memref<!tpu.dma_semaphore, #tpu.memory_space<semaphore_mem>>
        tpu.enqueue_dma source(%34 : memref<128xf32, #tpu.memory_space<any>>) target(%36 : memref<128xf32, #tpu.memory_space<vmem>>) target_semaphore(%38 : memref<!tpu.dma_semaphore, #tpu.memory_space<semaphore_mem>>)
      }
      %c16_i32_15 = arith.constant 16 : i32
    }
    %c8_i32_1 = arith.constant 8 : i32
    %c0_i32_2 = arith.constant 0 : i32
    %c8_i32_3 = arith.constant 8 : i32
    %2 = arith.addi %c0_i32_2, %c8_i32_3 : i32
    %c1_i32_4 = arith.constant 1 : i32
    scf.for %arg7 = %c0_i32_2 to %2 step %c1_i32_4  : i32 {
      %c1_i32_11 = arith.constant 1 : i32
      %20 = arith.muli %arg7, %c1_i32_11 : i32
      %c0_i32_12 = arith.constant 0 : i32
      %21 = arith.addi %c0_i32_12, %20 : i32
      %c0_i32_13 = arith.constant 0 : i32
      %c16_i32 = arith.constant 16 : i32
      %22 = arith.addi %c0_i32_13, %c16_i32 : i32
      %c1_i32_14 = arith.constant 1 : i32
      scf.for %arg8 = %c0_i32_13 to %22 step %c1_i32_14  : i32 {
        %c1_i32_16 = arith.constant 1 : i32
        %23 = arith.muli %arg8, %c1_i32_16 : i32
        %c0_i32_17 = arith.constant 0 : i32
        %24 = arith.addi %c0_i32_17, %23 : i32
        %25 = arith.addi %0, %21 : i32
        %26 = arith.index_cast %25 : i32 to index
        %27 = arith.index_cast %24 : i32 to index
        %28 = memref.load %arg1[%26, %27] : memref<16x16xi32, #tpu.memory_space<smem>>
        %c0_i32_18 = arith.constant 0 : i32
        %29 = arith.maxsi %28, %c0_i32_18 : i32
        %c511_i32 = arith.constant 511 : i32
        %30 = arith.minsi %29, %c511_i32 : i32
        %c16_i32_19 = arith.constant 16 : i32
        %31 = arith.muli %21, %c16_i32_19 : i32
        %32 = arith.addi %31, %24 : i32
        %c0_i32_20 = arith.constant 0 : i32
        %c0_i32_21 = arith.constant 0 : i32
        %33 = tpu.memref_slice %arg3[%30, %c0_i32_21] : memref<512x128xf32, #tpu.memory_space<any>> -> memref<1x128xf32, #tpu.memory_space<any>>
        %34 = tpu.memref_squeeze %33 : memref<1x128xf32, #tpu.memory_space<any>> -> memref<128xf32, #tpu.memory_space<any>>
        %c0_i32_22 = arith.constant 0 : i32
        %35 = tpu.memref_slice %arg5[%32, %c0_i32_22] : memref<128x128xf32, #tpu.memory_space<vmem>> -> memref<1x128xf32, #tpu.memory_space<vmem>>
        %36 = tpu.memref_squeeze %35 : memref<1x128xf32, #tpu.memory_space<vmem>> -> memref<128xf32, #tpu.memory_space<vmem>>
        %37 = tpu.memref_slice %arg6[%c0_i32_20] : memref<1x!tpu.dma_semaphore, #tpu.memory_space<semaphore_mem>> -> memref<1x!tpu.dma_semaphore, #tpu.memory_space<semaphore_mem>>
        %38 = tpu.memref_squeeze %37 : memref<1x!tpu.dma_semaphore, #tpu.memory_space<semaphore_mem>> -> memref<!tpu.dma_semaphore, #tpu.memory_space<semaphore_mem>>
        tpu.wait_dma2 semaphore(%38 : memref<!tpu.dma_semaphore, #tpu.memory_space<semaphore_mem>>) src(%34 : memref<128xf32, #tpu.memory_space<any>>) dst(%36 : memref<128xf32, #tpu.memory_space<vmem>>)
      }
      %c16_i32_15 = arith.constant 16 : i32
    }
    %c8_i32_5 = arith.constant 8 : i32
    %c0 = arith.constant 0 : index
    %c0_6 = arith.constant 0 : index
    %3 = vector.load %arg2[%c0, %c0_6] : memref<8x1xf32, #tpu.memory_space<vmem>>, vector<8x1xf32>
    %4 = tpu.iota {dimensions = array<i32: 1>} : vector<8x16xi32>
    %5 = arith.sitofp %4 : vector<8x16xi32> to vector<8x16xf32>
    %6 = vector.broadcast %3 : vector<8x1xf32> to vector<8x16xf32>
    %7 = arith.cmpf olt, %5, %6 : vector<8x16xf32>
    %8 = arith.extui %7 : vector<8x16xi1> to vector<8x16xi32>
    %9 = arith.sitofp %8 : vector<8x16xi32> to vector<8x16xf32>
    %c0_7 = arith.constant 0 : index
    %c0_8 = arith.constant 0 : index
    %10 = vector.load %arg5[%c0_7, %c0_8] : memref<128x128xf32, #tpu.memory_space<vmem>>, vector<128x128xf32>
    %11 = vector.shape_cast %10 : vector<128x128xf32> to vector<8x16x128xf32>
    %12 = vector.shape_cast %9 : vector<8x16xf32> to vector<8x16x1xf32>
    %13 = vector.broadcast %12 : vector<8x16x1xf32> to vector<8x16x128xf32>
    %14 = arith.mulf %11, %13 : vector<8x16x128xf32>
    %cst = arith.constant dense<0.000000e+00> : vector<8x128xf32>
    %15 = vector.multi_reduction <add>, %14, %cst [1] : vector<8x16x128xf32> to vector<8x128xf32>
    %16 = tpu.reciprocal %3 {approx = true} : vector<8x1xf32> -> vector<8x1xf32>
    %17 = vector.broadcast %16 : vector<8x1xf32> to vector<8x128xf32>
    %18 = arith.mulf %15, %17 : vector<8x128xf32>
    %c0_9 = arith.constant 0 : index
    %c0_10 = arith.constant 0 : index
    %19 = vector.load %arg4[%c0_9, %c0_10] : memref<8x128xf32, #tpu.memory_space<vmem>>, vector<8x128xf32>
    tpu.vector_store %arg4[%c0_9, %c0_10], %18 {strides = array<i32>} : memref<8x128xf32, #tpu.memory_space<vmem>>, vector<8x128xf32>,
    return
  }
  func.func @transform_0(%arg0: i32, %arg1: memref<16x16xi32, #tpu.memory_space<smem>>) -> (i32, i32) {
    %c0_i32 = arith.constant 0 : i32
    %c0_i32_0 = arith.constant 0 : i32
    return %arg0, %c0_i32 : i32, i32
  }
  func.func @transform_2(%arg0: i32, %arg1: memref<16x16xi32, #tpu.memory_space<smem>>) -> (i32, i32) {
    %c0_i32 = arith.constant 0 : i32
    %c0_i32_0 = arith.constant 0 : i32
    return %arg0, %c0_i32 : i32, i32
  }
}

</mosaic_0001>

<bundles_post_ra>
// kernel: tpu_custom_call.1
= control target key start
LH: loop header
LB: loop body
LE: loop exit
PB: predicated region body
PF: predicated region fallthrough
CT: control target
= control target key end

     0   :  { %s949_s0 = inlined_call_operand.vmem [shape: s32[16,16], index: 0, kind: input, shape index: {}]   ;;  %s950_s1 = inlined_call_operand.vmem [shape: f32[16,1], index: 1, kind: input, shape index: {}]   ;;  %s951_s2 = inlined_call_operand.hbm [shape: f32[512,128], index: 2, kind: input, shape index: {}]   ;;  %s952_s3 = inlined_call_operand.hbm [shape: f32[16,128], index: 3, kind: output, shape index: {}]  }
   0x1   :  { %954 = sst [smem:[#allocation15_spill]] %s950_s1  ;;  %s8_s14 = sshll.u32 %s949_s0, 4  ;;  %s9_s14 = int_to_ptr.vmem [resolvable:$true] %s8_s14 }
   0x2   :  { %s637_s15 = scalar_lea.vmem %s9_s14, 256  ;;  %p642_p1 = scmp.lt.s32.totalorder %s9_s14, %s9_s14 }
   0x3   :  { %p638_p0 = scmp.ne.s32.totalorder %s9_s14, %s637_s15  ;;  %p643_p2 = scmp.lt.s32.totalorder %s637_s15, %s637_s15 }
   0x5   :  { %p644_p3 = por %p643_p2, %p642_p1 }
   0x7   :  { %p645_p4 = pnand %p644_p3, %p638_p0 }
   0x9   :  { %648 = shalt.err (!%p645_p4)  }
   0xa   :  { %s773_s16 = smov [#allocation5]  }
   0xb   :  { %11 = dma.vmem_to_smem %s9_s14, 256, %s773_s16, [#allocation4] }
   0xc   :  { %733 = dma.done.wait [#allocation4], 256 }
   0xd   :  { %734 = vsyncadd [#allocation4], 4294967040 }
   0xe   :  { %13 = sfence }
   0xf   :  { %14 = vsyncpa [#allocation7], 0 }
  0x10   :  { %16 = vsyncpa [#allocation7 + $0x1], 0  ;;  %s801_s17 = smov 0   ;;  %s803_s18 = smov 0  }
  0x11   :  { %s805_s0 = smov 0   ;;  %s807_s19 = smov 0  }
  0x12 LB: > { %s822_s20 = sadd.s32 4294967295, %s755_s19   ;;  %s536_s21 = sadd.s32 4294967294, %s755_s19   ;;  %s755_s19 = sphi %s807_s19, %s966_s19   ;;  %s751_s0 = sphi %s805_s0, %s965_s0   ;;  %s747_s18 = sphi %s803_s18, %s964_s18   ;;  %s743_s17 = sphi %s801_s17, %s963_s17  }
  0x13   : > { %s826_s22 = sadd.s32 1, %s755_s19   ;;  %s55_s23 = sadd.s32 1, %s751_s0 }
  0x14   : > { %s52_s24 = ssub.s32 %s755_s19, %s826_s22  ;;  %p65_p5 = scmp.ne.s32.totalorder %s751_s0, %s747_s18 }
  0x15   : > { %p53_p6 = scmp.eq.s32.totalorder %s52_s24, 0  ;;  %p66_p7 = scmp.eq.s32.totalorder %s822_s20, 1 }
  0x16   : > { %p71_p8 = scmp.ne.s32.totalorder %s747_s18, %s743_s17  ;;  %p72_p9 = scmp.eq.s32.totalorder %s536_s21, 1 }
  0x17   : > { %s837_s25 = scalar_select %p53_p6, %s751_s0, %s55_s23  }
  0x18   : > { %p839_p10 = por %p66_p7, %p65_p5  ;;  %p843_p11 = por %p72_p9, %p71_p8 }
  0x19   : > { %p539_p12 = scmp.ge.s32.totalorder %s755_s19, 1  ;;  %p97_p13 = scmp.lt.s32.totalorder %s755_s19, 3 }
  0x1a   : > { %s956_s27 = scalar_select %p843_p11, 1, 0 }
  0x1b   : > { %p98_p0 = pnand %p539_p12, %p97_p13 }
  0x1c   : > { %s953_s28 = sand.u32 (!%p98_p0), 1, %s747_s18   ;;  %p116_p1 = scmp.lt.s32.totalorder (!%p98_p0), %s822_s20, 1 }
  0x1d   : > { %101 = sbr.rel (%p98_p0) target bundleno = 429 (0x1ad), region = 24  ;;  %s853_s29 = sshll.u32 (!%p98_p0), %s953_s28, 3 }
  0x1e   : > { %s957_s1 = sld [smem:[#allocation15_spill]] (!%p98_p0)  ;;  %s863_s10 = smov (!%p98_p0), 0  }
  0x24   : > { %s117_s4 = scalar_select %p116_p1, %s822_s20, 1 }
  0x26   : > { %s541_s5 = sshll.u32 %s117_s4, 3 }
  0x27   : > { %s860_s8 = scalar_lea.vmem %s957_s1, %s541_s5 }
  0x28 LB: >> { %s868_s11 = smov 0   ;;  %s759_s10 = sphi %s863_s10, %s126_s10  }
  0x29 LB: >>> { %s958_s30 = sshll.u32 %s822_s20, 3  ;;  %s134_s13 = sshra.s32 %s763_s11, 7  ;;  %s763_s11 = sphi %s868_s11, %s132_s11  }
  0x2a   : >>> { %s133_s12 = sadd.s32 %s759_s10, %s958_s30  ;;  %s139_s14 = sand.u32 127, %s763_s11 }
  0x2b   : >>> { %s136_s15 = sadd.s32 %s134_s13, %s133_s12  ;;  %s549_s21 = sshll.u32 %s759_s10, 4 }
  0x2c   : >>> { %s543_s16 = sshll.u32 %s136_s15, 7  ;;  %s147_s4 = sadd.s32 %s763_s11, %s549_s21 }
  0x2d   : >>> { %s140_s23 = sadd.s32 %s543_s16, %s139_s14  ;;  %s150_s5 = scalar_lea.vmem [#allocation2], %s147_s4 }
  0x2e   : >>> { %s141_s24 = sld [smem:[#allocation5 + %s140_s23]]  ;;  %s158_s6 = sshll.u32 %s150_s5, 4  ;;  %s159_s6 = int_to_ptr.vmem [resolvable:$true] %s158_s6 }
  0x2f   : >>> { %s651_s14 = scalar_lea.hbm %s951_s2, 8192 }
  0x34   : >>> { %p142_p2 = scmp.gt.s32.totalorder %s141_s24, 0  ;;  %p544_p3 = scmp.lt.s32.totalorder %s141_s24, 511 }
  0x36   : >>> { %s968_s24 = smov (!%p142_p2, %s141_s24), 0 }
  0x37   : >>> { %s970_s24 = smov (!%p544_p3, %s968_s24), 511 }
  0x38   : >>> { %s550_s7 = sshll.u32 %s970_s24, 4 }
  0x39   : >>> { %s149_s30 = scalar_lea.hbm %s951_s2, %s550_s7 }
  0x3a   : >>> { %s649_s1 = scalar_lea.hbm %s149_s30, 16  ;;  %p652_p5 = scmp.lt.u32.totalorder %s149_s30, %s951_s2 }
  0x3b   : >>> { %p650_p4 = scmp.ne.s32.totalorder %s149_s30, %s649_s1  ;;  %p653_p6 = scmp.lt.u32.totalorder %s651_s14, %s649_s1 }
  0x3c   : >>> { %p655_p8 = scmp.lt.u32.totalorder %s649_s1, %s149_s30 }
  0x3d   : >>> { %p654_p7 = por %p653_p6, %p652_p5 }
  0x3f   : >>> { %p656_p9 = por %p655_p8, %p654_p7 }
  0x41   : >>> { %p657_p12 = pnand %p656_p9, %p650_p4 }
  0x43   : >>> { %660 = shalt.err (!%p657_p12)  }
  0x44   : >>> { %s661_s21 = scalar_lea.vmem %s159_s6, 16  ;;  %s774_s28 = smov [#allocation2]  }
  0x45   : >>> { %p662_p13 = scmp.ne.s32.totalorder %s159_s6, %s661_s21  ;;  %s663_s9 = sshll.u32 %s774_s28, 4  ;;  %s664_s9 = int_to_ptr.vmem [resolvable:$false] %s663_s9 }
  0x46   : >>> { %s665_s23 = scalar_lea.vmem %s664_s9, 2048  ;;  %p666_p0 = scmp.lt.s32.totalorder %s159_s6, %s664_s9 }
  0x47   : >>> { %p667_p1 = scmp.lt.s32.totalorder %s665_s23, %s661_s21 }
  0x49   : >>> { %p668_p2 = por %p667_p1, %p666_p0 }
  0x4b   : >>> { %p669_p3 = pnand %p668_p2, %p662_p13 }
  0x4d   : >>> { %672 = shalt.err (!%p669_p3)  }
  0x4e   : >>> { %161 = dma.hbm_to_vmem [thread:$0]  %s149_s30, 16, %s159_s6, [#allocation3] }
  0x4f   : >>> { %s132_s11 = sadd.s32 1, %s763_s11  }
  0x50   : >>> { %p129_p11 = scmp.ge.s32.totalorder %s132_s11, 16  }
  0x51   : >> { %s126_s10 = sadd.s32 (%p129_p11), 1, %s759_s10  }
  0x52   : >> { %131 = sbr.rel (!%p129_p11) target bundleno = 41 (0x29), region = 93  ;;  %p123_p4 = scmp.ge.s32.totalorder (%p129_p11), %s126_s10, 8  }
  0x59   : > { %125 = sbr.rel (!%p123_p4) target bundleno = 40 (0x28), region = 104  ;;  %s765_s1 = smov (%p123_p4), 0  }
  0x60 LB: >> { %s769_s24 = smov 0   ;;  %s767_s1 = sphi %s765_s1, %s167_s1  }
  0x61 LB: >>> { %735 = dma.done.wait [#allocation3], 16  ;;  %s771_s24 = sphi %s769_s24, %s173_s24  }
  0x62   : >>> { %736 = vsyncadd [#allocation3], 4294967280  ;;  %s173_s24 = sadd.s32 1, %s771_s24  }
  0x63   : >>> { %p170_p5 = scmp.ge.s32.totalorder %s173_s24, 16  }
  0x64   : >> { %s167_s1 = sadd.s32 (%p170_p5), 1, %s767_s1  }
  0x65   : >> { %172 = sbr.rel (!%p170_p5) target bundleno = 97 (0x61), region = 115  ;;  %p164_p11 = scmp.ge.s32.totalorder (%p170_p5), %s167_s1, 8  }
  0x6c   : > { %166 = sbr.rel (!%p164_p11) target bundleno = 96 (0x60), region = 126  ;;  %v185_v0 = vld [vmem:[%s860_s8] sm:$0xff] (%p164_p11)  ;;  %v775_v1 = vmov (%p164_p11), 0   ;;  %v186_v2 = vlaneseq (%p164_p11)  ;;  %v776_v8 = vmov (%p164_p11), 0.0   ;;  %v200_v32 = vld [vmem:[#allocation2 + $0x18] sm:$0xff] (%p164_p11)  ;;  %v199_v33 = vld [vmem:[#allocation2 + $0x10] sm:$0xff] (%p164_p11) }
  0x6d   : > { %633 = vset.pattern.permute.xlu0 (%p164_p11), %v775_v1  ;;  %634 = vset.pattern.permute.xlu1 (%p164_p11), %v775_v1  ;;  %635 = vrcp.f32 (%p164_p11), %v185_v0  ;;  %v201_v36 = vld [vmem:[#allocation2 + $0x20] sm:$0xff] (%p164_p11)  ;;  %v202_v37 = vld [vmem:[#allocation2 + $0x28] sm:$0xff] (%p164_p11)  ;;  %v204_v40 = vld [vmem:[#allocation2 + $0x38] sm:$0xff] (%p164_p11)  ;;  %vm410_vm1 = vcmask (%p164_p11), 1041409   ;;  %vm413_vm2 = vcmask (%p164_p11), 1042434   ;;  %vm416_vm3 = vcmask (%p164_p11), 1043459  }
  0x6e   : > { %191 = vperm.xlu0 (%p164_p11), %633, %v185_v0   ;;  %v187_v3 = vand.u32 (%p164_p11), 127, %v186_v2  ;;  %v214_v4 = vshrl.u32 (%p164_p11), %v186_v2, 7  ;;  %v198_v38 = vld [vmem:[#allocation2 + $0x8] sm:$0xff] (%p164_p11)  ;;  %v197_v39 = vld [vmem:[#allocation2] sm:$0xff] (%p164_p11)  ;;  %v203_v41 = vld [vmem:[#allocation2 + $0x30] sm:$0xff] (%p164_p11)  ;;  %vm419_vm4 = vcmask (%p164_p11), 1044484  }
  0x6f   : > { %v206_v46 = vld [vmem:[#allocation2 + $0x48] sm:$0xff] (%p164_p11)  ;;  %v205_v48 = vld [vmem:[#allocation2 + $0x40] sm:$0xff] (%p164_p11)  ;;  %v208_v54 = vld [vmem:[#allocation2 + $0x58] sm:$0xff] (%p164_p11)  ;;  %vm422_vm5 = vcmask (%p164_p11), 1045509   ;;  %vm425_vm6 = vcmask (%p164_p11), 1046534   ;;  %s553_s30 = sshll.u32 (%p164_p11), %s822_s20, 7 }
  0x70   : > { %v188_v5 = vcvt.s32.f32 (%p164_p11), %v187_v3  ;;  %v226_v6 = vsub.s32 (%p164_p11), 1, %v214_v4  ;;  %v237_v11 = vsub.s32 (%p164_p11), 2, %v214_v4  ;;  %v215_v13 = vsub.s32 (%p164_p11), 0, %v214_v4  ;;  %v207_v55 = vld [vmem:[#allocation2 + $0x50] sm:$0xff] (%p164_p11)  ;;  %v210_v2 = vld [vmem:[#allocation2 + $0x68] sm:$0xff] (%p164_p11)  ;;  %v209_v3 = vld [vmem:[#allocation2 + $0x60] sm:$0xff] (%p164_p11)  ;;  %s903_s5 = scalar_lea.hbm (%p164_p11), %s952_s3, %s553_s30 }
  0x71   : > { %v248_v15 = vsub.s32 (%p164_p11), 3, %v214_v4  ;;  %v259_v17 = vsub.s32 (%p164_p11), 4, %v214_v4  ;;  %v270_v19 = vsub.s32 (%p164_p11), 5, %v214_v4  ;;  %v281_v21 = vsub.s32 (%p164_p11), 6, %v214_v4  ;;  %s959_s8 = scalar_lea.vmem (%p164_p11), [#allocation6], %s853_s29  ;;  %s961_s6 = sand.u32 (%p164_p11), 1, %s747_s18  }
  0x72   : > { %v292_v23 = vsub.s32 (%p164_p11), 7, %v214_v4  ;;  %s446_s10 = sshll.u32 (%p164_p11), %s959_s8, 4  ;;  %vm428_vm7 = vcmask (%p164_p11), 1047559   ;;  %s960_s20 = smov (%p164_p11), %s959_s8  ;;  %s905_s10 = int_to_ptr.vmem [resolvable:$true] %s446_s10 }
  0x73   : > { %s433_s7 = scalar_lea.sflag [#allocation7], %s961_s6  ;;  %s673_s12 = scalar_lea.vmem %s905_s10, 128 }
  0x74   : > { %p674_p6 = scmp.ne.s32.totalorder %s905_s10, %s673_s12  ;;  %s777_s13 = smov [#allocation6]  }
  0x75   : > { %s677_s14 = sshll.u32 %s777_s13, 4  ;;  %s678_s14 = int_to_ptr.vmem [resolvable:$false] %s677_s14 }
  0x76   : > { %p675_p7 = pnand %p674_p6, %p839_p10  ;;  %s679_s15 = scalar_lea.vmem %s678_s14, 256 }
  0x77   : > { %v636_v25 = vpop.eup %635  ;;  %p680_p9 = scmp.lt.s32.totalorder %s905_s10, %s678_s14  ;;  %p681_p12 = scmp.lt.s32.totalorder %s679_s15, %s673_s12 }
  0x78   : > { %p676_p8 = pneg %p675_p7 }
  0x79   : > { %p682_p13 = por %p681_p12, %p680_p9 }
  0x7b   : > { %p683_p0 = pnand %p682_p13, %p676_p8 }
  0xed   : > { %v192_v7 = vpop.permute.xlu0 %191 }
  0xee   : > { %vm194_vm0 = vcmp.lt.f32.partialorder %v188_v5, %v192_v7 }
  0xef   : > { %v551_v9 = vsel %vm194_vm0, 1.0, %v776_v8 }
  0xf0   : > { %v227_v10 = vrot.slane %v551_v9, %v226_v6  ;;  %v238_v12 = vrot.slane %v551_v9, %v237_v11  ;;  %v216_v14 = vrot.slane %v551_v9, %v215_v13  ;;  %v249_v16 = vrot.slane %v551_v9, %v248_v15 }
  0xf1   : > { %v260_v18 = vrot.slane %v551_v9, %v259_v17  ;;  %v271_v20 = vrot.slane %v551_v9, %v270_v19  ;;  %v282_v22 = vrot.slane %v551_v9, %v281_v21  ;;  %v293_v24 = vrot.slane %v551_v9, %v292_v23 }
  0xf2   : > { %233 = vbcast.lane.b32.xlu1 %v227_v10, 264  ;;  %229 = vbcast.lane.b32.xlu0 %v227_v10, 256 }
  0xf6   : > { %240 = vbcast.lane.b32.xlu1 %v238_v12, 256  ;;  %244 = vbcast.lane.b32.xlu0 %v238_v12, 264 }
  0xfa   : > { %222 = vbcast.lane.b32.xlu0 %v216_v14, 264  ;;  %218 = vbcast.lane.b32.xlu1 %v216_v14, 256  ;;  %v212_v14 = vld [vmem:[#allocation2 + $0x78] sm:$0xff] }
  0xfe   : > { %255 = vbcast.lane.b32.xlu0 %v249_v16, 264  ;;  %251 = vbcast.lane.b32.xlu1 %v249_v16, 256 }
 0x102   : > { %266 = vbcast.lane.b32.xlu0 %v260_v18, 264  ;;  %262 = vbcast.lane.b32.xlu1 %v260_v18, 256  ;;  %v211_v18 = vld [vmem:[#allocation2 + $0x70] sm:$0xff] }
 0x106   : > { %277 = vbcast.lane.b32.xlu0 %v271_v20, 264  ;;  %273 = vbcast.lane.b32.xlu1 %v271_v20, 256 }
 0x10a   : > { %288 = vbcast.lane.b32.xlu0 %v282_v22, 264  ;;  %284 = vbcast.lane.b32.xlu1 %v282_v22, 256 }
 0x10e   : > { %299 = vbcast.lane.b32.xlu0 %v293_v24, 264  ;;  %295 = vbcast.lane.b32.xlu1 %v293_v24, 256 }
 0x112   : > { %376 = vperm.xlu1 %634, %v636_v25  }
 0x164   : > { %v234_v26 = vpop.permute.xlu1 %233  ;;  %v230_v27 = vpop.permute.xlu0 %229 }
 0x165   : > { %v304_v42 = vmul.f32 %v234_v26, %v200_v32  ;;  %v303_v43 = vmul.f32 %v230_v27, %v199_v33 }
 0x167   : > { %v324_v58 = vadd.f32 %v304_v42, %v303_v43 }
 0x168   : > { %v241_v28 = vpop.permute.xlu1 %240  ;;  %v245_v29 = vpop.permute.xlu0 %244 }
 0x169   : > { %v305_v44 = vmul.f32 %v241_v28, %v201_v36  ;;  %v306_v45 = vmul.f32 %v245_v29, %v202_v37  ;;  %v325_v6 = vrot.slane %v324_v58, 4 }
 0x16b   : > { %v331_v59 = vadd.f32 %v306_v45, %v305_v44  ;;  %v326_v19 = vadd.f32 %v325_v6, %v324_v58 }
 0x16c   : > { %v223_v30 = vpop.permute.xlu0 %222  ;;  %v219_v31 = vpop.permute.xlu1 %218 }
 0x16d   : > { %v302_v50 = vmul.f32 %v223_v30, %v198_v38  ;;  %v301_v51 = vmul.f32 %v219_v31, %v197_v39  ;;  %v332_v7 = vrot.slane %v331_v59, 4  ;;  %v327_v30 = vrot.slane %v326_v19, 2 }
 0x16f   : > { %v317_v62 = vadd.f32 %v302_v50, %v301_v51  ;;  %v333_v20 = vadd.f32 %v332_v7, %v331_v59  ;;  %v328_v39 = vadd.f32 %v327_v30, %v326_v19 }
 0x170   : > { %v256_v34 = vpop.permute.xlu0 %255  ;;  %v252_v35 = vpop.permute.xlu1 %251 }
 0x171   : > { %v308_v52 = vmul.f32 %v256_v34, %v204_v40  ;;  %v307_v53 = vmul.f32 %v252_v35, %v203_v41  ;;  %v318_v10 = vrot.slane %v317_v62, 4  ;;  %v334_v31 = vrot.slane %v333_v20, 2 }
 0x173   : > { %v338_v63 = vadd.f32 %v308_v52, %v307_v53  ;;  %v319_v23 = vadd.f32 %v318_v10, %v317_v62  ;;  %v335_v40 = vadd.f32 %v334_v31, %v333_v20 }
 0x174   : > { %v267_v47 = vpop.permute.xlu0 %266  ;;  %v263_v49 = vpop.permute.xlu1 %262 }
 0x175   : > { %v310_v56 = vmul.f32 %v267_v47, %v206_v46  ;;  %v309_v57 = vmul.f32 %v263_v49, %v205_v48  ;;  %v339_v11 = vrot.slane %v338_v63, 4  ;;  %v320_v33 = vrot.slane %v319_v23, 2 }
 0x176   : > { %v329_v48 = vrot.slane %v328_v39, 1  ;;  %v336_v49 = vrot.slane %v335_v40, 1 }
 0x177   : > { %v345_v4 = vadd.f32 %v310_v56, %v309_v57  ;;  %v340_v24 = vadd.f32 %v339_v11, %v338_v63  ;;  %v321_v42 = vadd.f32 %v320_v33, %v319_v23 }
 0x178   : > { %v278_v60 = vpop.permute.xlu0 %277  ;;  %v274_v61 = vpop.permute.xlu1 %273  ;;  %v330_v56 = vadd.f32 %v329_v48, %v328_v39  ;;  %v337_v57 = vadd.f32 %v336_v49, %v335_v40 }
 0x179   : > { %v312_v0 = vmul.f32 %v278_v60, %v208_v54  ;;  %v311_v1 = vmul.f32 %v274_v61, %v207_v55  ;;  %v346_v15 = vrot.slane %v345_v4, 4  ;;  %v341_v34 = vrot.slane %v340_v24, 2 }
 0x17a   : > { %v322_v50 = vrot.slane %v321_v42, 1 }
 0x17b   : > { %v352_v5 = vadd.f32 %v312_v0, %v311_v1  ;;  %v347_v28 = vadd.f32 %v346_v15, %v345_v4  ;;  %v342_v43 = vadd.f32 %v341_v34, %v340_v24 }
 0x17c   : > { %v289_v8 = vpop.permute.xlu0 %288  ;;  %v285_v9 = vpop.permute.xlu1 %284  ;;  %v323_v58 = vadd.f32 %v322_v50, %v321_v42 }
 0x17d   : > { %v314_v12 = vmul.f32 %v289_v8, %v210_v2  ;;  %v313_v13 = vmul.f32 %v285_v9, %v209_v3  ;;  %v353_v16 = vrot.slane %v352_v5, 4  ;;  %v348_v37 = vrot.slane %v347_v28, 2 }
 0x17e   : > { %v343_v51 = vrot.slane %v342_v43, 1 }
 0x17f   : > { %v359_v17 = vadd.f32 %v314_v12, %v313_v13  ;;  %v354_v29 = vadd.f32 %v353_v16, %v352_v5  ;;  %v349_v46 = vadd.f32 %v348_v37, %v347_v28 }
 0x180   : > { %v300_v21 = vpop.permute.xlu0 %299  ;;  %v296_v22 = vpop.permute.xlu1 %295  ;;  %v344_v59 = vadd.f32 %v343_v51, %v342_v43 }
 0x181   : > { %v360_v25 = vrot.slane %v359_v17, 4  ;;  %v316_v26 = vmul.f32 %v300_v21, %v212_v14  ;;  %v315_v27 = vmul.f32 %v296_v22, %v211_v18  ;;  %v355_v38 = vrot.slane %v354_v29, 2 }
 0x182   : > { %v350_v54 = vrot.slane %v349_v46, 1 }
 0x183   : > { %v366_v32 = vadd.f32 %v316_v26, %v315_v27  ;;  %v361_v35 = vadd.f32 %v360_v25, %v359_v17  ;;  %v356_v47 = vadd.f32 %v355_v38, %v354_v29 }
 0x184   : > { %v351_v3 = vadd.f32 %v350_v54, %v349_v46 }
 0x185   : > { %v367_v36 = vrot.slane %v366_v32, 4  ;;  %v362_v44 = vrot.slane %v361_v35, 2  ;;  %v357_v55 = vrot.slane %v356_v47, 1 }
 0x187   : > { %v368_v41 = vadd.f32 %v367_v36, %v366_v32  ;;  %v363_v52 = vadd.f32 %v362_v44, %v361_v35  ;;  %v358_v4 = vadd.f32 %v357_v55, %v356_v47 }
 0x189   : > { %v369_v45 = vrot.slane %v368_v41, 2  ;;  %v364_v60 = vrot.slane %v363_v52, 1 }
 0x18b   : > { %v370_v53 = vadd.f32 %v369_v45, %v368_v41  ;;  %v365_v11 = vadd.f32 %v364_v60, %v363_v52 }
 0x18d   : > { %v371_v61 = vrot.slane %v370_v53, 1 }
 0x18f   : > { %v372_v12 = vadd.f32 %v371_v61, %v370_v53 }
 0x191   : > { %v377_v62 = vpop.permute.xlu1 %376 }
 0x192   : > { %v378_v63 = vrot.slane %v377_v62, 1  ;;  %v379_v0 = vrot.slane %v377_v62, 2  ;;  %v380_v1 = vrot.slane %v377_v62, 3  ;;  %v381_v2 = vrot.slane %v377_v62, 4 }
 0x193   : > { %v382_v5 = vrot.slane %v377_v62, 5  ;;  %v383_v6 = vrot.slane %v377_v62, 6  ;;  %v384_v10 = vrot.slane %v377_v62, 7  ;;  %v393_v14 = vmul.f32 %v377_v62, %v323_v58 }
 0x194   : > { %v394_v7 = vmul.f32 %v378_v63, %v330_v56  ;;  %v395_v8 = vmul.f32 %v379_v0, %v337_v57  ;;  %v396_v9 = vmul.f32 %v380_v1, %v344_v59  ;;  %v397_v13 = vmul.f32 %v381_v2, %v351_v3 }
 0x195   : > { %v398_v17 = vmul.f32 %v382_v5, %v358_v4  ;;  %v399_v18 = vmul.f32 %v383_v6, %v365_v11  ;;  %v400_v19 = vmul.f32 %v384_v10, %v372_v12 }
 0x196   : > { %v409_v15 = vrot.slane %v394_v7, 7  ;;  %v412_v16 = vrot.slane %v395_v8, 6  ;;  %v415_v21 = vrot.slane %v396_v9, 5  ;;  %v418_v23 = vrot.slane %v397_v13, 4 }
 0x197   : > { %v421_v25 = vrot.slane %v398_v17, 3  ;;  %v424_v27 = vrot.slane %v399_v18, 2  ;;  %v427_v29 = vrot.slane %v400_v19, 1 }
 0x198   : > { %v411_v20 = vsel %vm410_vm1, %v409_v15, %v393_v14 }
 0x199   : > { %v414_v22 = vsel %vm413_vm2, %v412_v16, %v411_v20 }
 0x19a   : > { %v417_v24 = vsel %vm416_vm3, %v415_v21, %v414_v22 }
 0x19b   : > { %v420_v26 = vsel %vm419_vm4, %v418_v23, %v417_v24 }
 0x19c   : > { %v423_v28 = vsel %vm422_vm5, %v421_v25, %v420_v26 }
 0x19d   : > { %v426_v30 = vsel %vm425_vm6, %v424_v27, %v423_v28 }
 0x19e   : > { %v429_v31 = vsel %vm428_vm7, %v427_v29, %v426_v30 }
 0x19f   : > { %431 = vst [vmem:[%s960_s20] sm:$0xff] %v429_v31 }
 0x1a0   : > { %686 = shalt.err (!%p683_p0)
}
 0x1a1   : > { %s687_s29 = scalar_lea.hbm %s903_s5, 128  ;;  %s691_s28 = scalar_lea.hbm %s952_s3, 256 }
 0x1a2   : > { %p688_p1 = scmp.ne.s32.totalorder %s903_s5, %s687_s29  ;;  %p692_p4 = scmp.lt.u32.totalorder %s903_s5, %s952_s3 }
 0x1a3   : > { %p693_p5 = scmp.lt.u32.totalorder %s691_s28, %s687_s29  ;;  %p695_p6 = scmp.lt.u32.totalorder %s687_s29, %s903_s5 }
 0x1a4   : > { %p689_p2 = pnand %p688_p1, %p839_p10 }
 0x1a5   : > { %p694_p11 = por %p693_p5, %p692_p4 }
 0x1a6   : > { %p690_p3 = pneg %p689_p2 }
 0x1a7   : > { %p696_p7 = por %p695_p6, %p694_p11 }
 0x1a9   : > { %p697_p8 = pnand %p696_p7, %p690_p3 }
 0x1ab   : > { %700 = shalt.err (!%p697_p8)
}
 0x1ac   : > { %559 = dma.vmem_to_hbm [thread:$0]  (%p839_p10), %s905_s10, 128, %s903_s5, %s433_s7  }
 0x1ad PF: > { %p565_p9 = scmp.ge.s32.totalorder %s755_s19, 2  ;;  %s458_s1 = sand.u32 1, %s743_s17  }
 0x1ae   : > { %p962_p12 = scmp.ne.s32.totalorder %s956_s27, 0  ;;  %s459_s24 = scalar_lea.sflag [#allocation7], %s458_s1 }
 0x1b0   : > { %p562_p13 = pnand %p565_p9, %p962_p12 }
 0x1b2   : > { %738 = dma.done.wait (!%p562_p13), %s459_s24, 128  }
 0x1b3   : > { %740 = vsyncadd (!%p562_p13), %s459_s24, 4294967168  ;;  %p19_p0 = scmp.ge.s32.totalorder %s826_s22, 4   ;;  %s963_s17 = smov %s747_s18 }
 0x1b4   : > { %s964_s18 = smov %s751_s0  ;;  %s965_s0 = smov %s837_s25 }
 0x1b5   : > { %s966_s19 = smov %s826_s22  ;;  %21 = sbr.rel (!%p19_p0) target bundleno = 18 (0x12), region = 137 }
 0x1bc   :  { %464 = vsyncpa [#allocation7], 1 }
 0x1bd   :  { %466 = vsyncpa [#allocation7 + $0x1], 1 }
 0x1be   :  { %467 = vsyncmov [#allocation3] }
 0x1c1   :  { %s468_s19 = vpop.sfrf %467 }
 0x1c2   :  { %p556_p10 = scmp.ne.s32.totalorder %s468_s19, 0 }
 0x1c4   :  { %472 = shalt.err (%p556_p10)  }

</bundles_post_ra>
